<compile_context>
chip_gen: v6e
topology: v6e:2x2x1
jax: 0.10.0
libtpu: 0.0.40
codegen_flags: <defaults>
</compile_context>

<pallas_src>
import jax
import jax.numpy as jnp
from jax import lax
from jax.experimental import pallas as pl
from jax.experimental.pallas import tpu as pltpu

STATE_DIM = 32
ACTION_DIM = 2
SPEED_HIDDENS = [8, 8]
FUSION_HIDDENS = [32, 64, 64, 32, 32]
OBS_DIM = STATE_DIM + 1


def _round_up(x, m):
    return (x + m - 1) // m * m


# -----------------------------------------------------------------------------
# Static packing layouts.
#   bf16 slab: every W^T (out, in) matrix that feeds the MXU.  The Identity
#              speed layer s1 is folded into r0_spd at pack time, so it is gone.
#   f32 slab : biases stored as (out, 1) columns + the tiny K=1 speed layer
#              (done on the VPU, not the MXU).
# -----------------------------------------------------------------------------

_WT_SPECS = [
    # name,     fan_out,            fan_in
    ("r0_img",  FUSION_HIDDENS[0],  STATE_DIM),
    ("r0_spd",  FUSION_HIDDENS[0],  SPEED_HIDDENS[1]),
    ("r0_act",  FUSION_HIDDENS[0],  ACTION_DIM),
    ("r1",      FUSION_HIDDENS[1],  FUSION_HIDDENS[0]),
    ("r2",      FUSION_HIDDENS[2],  FUSION_HIDDENS[1]),
    ("r3",      FUSION_HIDDENS[3],  FUSION_HIDDENS[2]),
    ("r4",      FUSION_HIDDENS[4],  FUSION_HIDDENS[3]),
    ("r5",      1,                  FUSION_HIDDENS[4]),
]


def _build_wt_layout():
    layout, off = {}, 0
    for name, fo, fi in _WT_SPECS:
        layout[name] = (off, fo, fi)
        off += _round_up(fo, 16)   # bf16 sublane packing: keep row offsets 16-aligned
    return layout, off


_WT_LAYOUT, _WT_ROWS = _build_wt_layout()   # 304 rows
_WT_COLS = 64                               # max fan_in


_FP_SPECS = [
    # name,    rows,               cols
    ("s0_w",   1,                  SPEED_HIDDENS[0]),
    ("s0_b",   1,                  SPEED_HIDDENS[0]),
    ("b_r0",   FUSION_HIDDENS[0],  1),
    ("b_r1",   FUSION_HIDDENS[1],  1),
    ("b_r2",   FUSION_HIDDENS[2],  1),
    ("b_r3",   FUSION_HIDDENS[3],  1),
    ("b_r4",   FUSION_HIDDENS[4],  1),
    ("b_r5",   1,                  1),
]


def _build_fp_layout():
    layout, off = {}, 0
    for name, r, c in _FP_SPECS:
        layout[name] = (off, r, c)
        off += _round_up(r, 8)
    return layout, off


_FP_LAYOUT, _FP_ROWS = _build_fp_layout()   # 248 rows
_FP_COLS = 8


# ----------------------------- kernel ----------------------------------------


def _wt(ref, name):
    """Static W^T (out, in) slice from the resident bf16 slab."""
    off, fo, fi = _WT_LAYOUT[name]
    return ref[off:off + fo, 0:fi]


def _fp(ref, name):
    """Static slice from the resident f32 slab (biases are (out, 1) columns)."""
    off, r, c = _FP_LAYOUT[name]
    return ref[off:off + r, 0:c]


def _make_kernel(bf16_epilogue):
    f32 = jnp.float32
    bf16 = jnp.bfloat16
    # Contract the last dim of both operands (x @ W with both row-major):
    # lhs = W^T (out, in), rhs = x (B, in)  ->  (out, B), i.e. batch on lanes.
    NT = (((1,), (1,)), ((), ()))

    def kernel(obs_ref, act_ref, wt_ref, fp_ref, out_ref):
        # obs_ref: (b_tile, 33)   act_ref: (b_tile, 2)     (natural HBM layout)
        # wt_ref : (_WT_ROWS, 64) bf16 resident W^T slab
        # fp_ref : (_FP_ROWS, 8)  f32  resident bias / speed-layer-0 slab
        # out_ref: (1, b_tile)    lane-dense output
        obs = obs_ref[...]
        img = obs[:, 0:STATE_DIM].astype(bf16)                 # (B, 32)
        speed = obs[:, STATE_DIM:STATE_DIM + 1]                # (B, 1)  f32
        act = act_ref[...].astype(bf16)                        # (B, 2)

        # --- speed encoder layer 0: Linear(1,8)+ReLU. K=1 -> VPU broadcast FMA ---
        s0_w = _fp(fp_ref, "s0_w")                             # (1, 8)
        s0_b = _fp(fp_ref, "s0_b")                             # (1, 8)
        if bf16_epilogue:
            hs = jnp.maximum(
                speed.astype(bf16) * s0_w.astype(bf16) + s0_b.astype(bf16), 0.0)
        else:
            hs = jnp.maximum(speed * s0_w + s0_b, 0.0).astype(bf16)   # (B, 8)
        # speed encoder layer 1 (Identity) is folded into r0_spd at pack time.

        def finish(acc_f32, bias_name, relu):
            b = _fp(fp_ref, bias_name)                         # (out, 1) f32
            if bf16_epilogue:
                r = acc_f32.astype(bf16) + b.astype(bf16)      # bf16 VALU (v6e/v7x)
            else:
                r = acc_f32 + b                                # f32 VALU (v5e-safe)
            if relu:
                r = jnp.maximum(r, 0.0)
            return r.astype(bf16)                              # MXU-ready

        # --- regressor layer 0: split-K over img / speed-embed / action ---------
        # All three are NT dots, so the (B, feature) inputs feed the MXU directly
        # and batch lands on the lane axis of the result (no transposes).
        acc = lax.dot_general(_wt(wt_ref, "r0_img"), img, NT,
                              preferred_element_type=f32)       # (32, B)
        acc += lax.dot_general(_wt(wt_ref, "r0_spd"), hs, NT,
                               preferred_element_type=f32)
        acc += lax.dot_general(_wt(wt_ref, "r0_act"), act, NT,
                               preferred_element_type=f32)
        h = finish(acc, "b_r0", relu=True)                      # (32, B) bf16

        # --- regressor hidden layers 1..4 (ReLU) --------------------------------
        for name in ("r1", "r2", "r3", "r4"):
            acc = jnp.dot(_wt(wt_ref, name), h, preferred_element_type=f32)
            h = finish(acc, "b_" + name, relu=True)

        # --- regressor output layer (Identity): f32, lane-dense (1, B) store ----
        out = jnp.dot(_wt(wt_ref, "r5"), h,
                      preferred_element_type=f32) + _fp(fp_ref, "b_r5")   # (1, B)
        out_ref[...] = out

    return kernel


# ----------------------------- wrapper ----------------------------------------


def _pick_tile(bs, block_b):
    block_b = max(128, _round_up(block_b, 128))
    if bs <= 128:
        return 128
    # Aim for >=2 grid steps so ("parallel",) can shard across the 2 TensorCores
    # on v7x (measured no-op on v5e/v6e, so always safe).
    return min(block_b, _round_up((bs + 1) // 2, 128))


def qfunction_forward(obs_feat, action, wt_slab, fp_slab, *, block_b=8192,
                      bf16_epilogue=None):
    """obs_feat: (bs, 33), action: (bs, 2), slabs from pack_params -> (bs,) f32."""
    bs = obs_feat.shape[0]
    if bf16_epilogue is None:
        try:
            kind = jax.devices()[0].device_kind.lower()
        except Exception:
            kind = ""
        bf16_epilogue = "v5" not in kind   # v5e has no bf16 VALU -> keep f32 epilogue

    b_tile = _pick_tile(bs, block_b)
    grid = pl.cdiv(bs, b_tile)
    # NOTE: b_tile=8192 keeps double-buffered inputs + activations well under the
    # default scoped VMEM limit even on v7x (64 MiB physical); no override needed.

    out = pl.pallas_call(
        _make_kernel(bool(bf16_epilogue)),
        out_shape=jax.ShapeDtypeStruct((1, bs), jnp.float32),
        grid=(grid,),
        in_specs=[
            pl.BlockSpec((b_tile, OBS_DIM), lambda i: (i, 0)),
            pl.BlockSpec((b_tile, ACTION_DIM), lambda i: (i, 0)),
            # resident weight/bias slabs: constant block index -> fetched once
            pl.BlockSpec((_WT_ROWS, _WT_COLS), lambda i: (0, 0)),
            pl.BlockSpec((_FP_ROWS, _FP_COLS), lambda i: (0, 0)),
        ],
        out_specs=pl.BlockSpec((1, b_tile), lambda i: (0, i)),
        compiler_params=pltpu.CompilerParams(
            dimension_semantics=("parallel",)),
    )(obs_feat.astype(jnp.float32), action.astype(jnp.float32), wt_slab, fp_slab)
    return out.reshape(-1)


# ----------------------------- params / packing --------------------------------


def init_linear(key, fan_in, fan_out):
    """PyTorch nn.Linear default init: U(-1/sqrt(fan_in), 1/sqrt(fan_in))."""
    kw, kb = jax.random.split(key)
    bound = 1.0 / jnp.sqrt(jnp.float32(fan_in))
    w = jax.random.uniform(kw, (fan_in, fan_out), jnp.float32, -bound, bound)
    b = jax.random.uniform(kb, (1, fan_out), jnp.float32, -bound, bound)
    return w, b


def init_params(key):
    keys = jax.random.split(key, 8)
    sw0, sb0 = init_linear(keys[0], 1, SPEED_HIDDENS[0])
    sw1, sb1 = init_linear(keys[1], SPEED_HIDDENS[0], SPEED_HIDDENS[1])
    sizes = [STATE_DIM + SPEED_HIDDENS[-1] + ACTION_DIM] + FUSION_HIDDENS + [1]
    reg = []
    for j in range(len(sizes) - 1):
        w, b = init_linear(keys[2 + j], sizes[j], sizes[j + 1])
        reg += [w, b]
    return (sw0, sb0, sw1, sb1, *reg)


def pack_params(params):
    """Pack into (bf16 W^T slab, f32 bias/speed slab); folds s1 into r0_spd."""
    (sw0, sb0, sw1, sb1,
     rw0, rb0, rw1, rb1, rw2, rb2, rw3, rb3, rw4, rb4, rw5, rb5) = params
    spd = SPEED_HIDDENS[-1]
    rw0_img = rw0[:STATE_DIM]                          # (32, 32)
    rw0_spd = rw0[STATE_DIM:STATE_DIM + spd]           # (8, 32)
    rw0_act = rw0[STATE_DIM + spd:]                    # (2, 32)

    # Exact fold of the Identity speed layer s1 into r0:
    #   spd_embed @ rw0_spd = (h_s @ sw1 + sb1) @ rw0_spd
    #                       = h_s @ (sw1 @ rw0_spd) + sb1 @ rw0_spd
    rw0_spd_f = sw1 @ rw0_spd                          # (8, 32)
    rb0_f = rb0 + jnp.reshape(sb1, (1, spd)) @ rw0_spd  # (1, 32)

    wt_entries = {
        "r0_img": rw0_img, "r0_spd": rw0_spd_f, "r0_act": rw0_act,
        "r1": rw1, "r2": rw2, "r3": rw3, "r4": rw4, "r5": rw5,
    }
    wt = jnp.zeros((_WT_ROWS, _WT_COLS), jnp.float32)
    for name, w in wt_entries.items():
        off, fo, fi = _WT_LAYOUT[name]
        assert w.shape == (fi, fo), (name, w.shape)
        wt = wt.at[off:off + fo, 0:fi].set(w.T)
    wt = wt.astype(jnp.bfloat16)                       # pre-cast: MXU-ready, half DMA

    fp_entries = {
        "s0_w": jnp.reshape(sw0, (1, SPEED_HIDDENS[0])),
        "s0_b": jnp.reshape(sb0, (1, SPEED_HIDDENS[0])),
        "b_r0": jnp.reshape(rb0_f, (-1, 1)),
        "b_r1": jnp.reshape(rb1, (-1, 1)),
        "b_r2": jnp.reshape(rb2, (-1, 1)),
        "b_r3": jnp.reshape(rb3, (-1, 1)),
        "b_r4": jnp.reshape(rb4, (-1, 1)),
        "b_r5": jnp.reshape(rb5, (-1, 1)),
    }
    fp = jnp.zeros((_FP_ROWS, _FP_COLS), jnp.float32)
    for name, v in fp_entries.items():
        off, r, c = _FP_LAYOUT[name]
        assert v.shape == (r, c), (name, v.shape)
        fp = fp.at[off:off + r, 0:c].set(v)
    return wt, fp


# ----------------------------- pure-JAX reference ------------------------------


def qfunction_ref(obs_feat, action, params):
    sw0, sb0, sw1, sb1 = params[:4]
    reg = params[4:]
    img = obs_feat[:, :STATE_DIM]
    speed = obs_feat[:, STATE_DIM:]
    h = jnp.maximum(speed @ sw0 + sb0, 0.0)
    spd = h @ sw1 + sb1
    x = jnp.concatenate([img, spd, action], axis=-1)
    for i in range(6):
        x = x @ reg[2 * i] + reg[2 * i + 1]
        if i < 5:
            x = jnp.maximum(x, 0.0)
    return x.reshape(-1)


if __name__ == "__main__":
    key = jax.random.PRNGKey(0)
    k_params, k_obs, k_act = jax.random.split(key, 3)

    params = init_params(k_params)
    wt_slab, fp_slab = pack_params(params)

    # primary check: small batch, single grid step (block larger than batch)
    bs = 8
    obs_feat = jax.random.normal(k_obs, (bs, OBS_DIM), jnp.float32)
    action = jax.random.normal(k_act, (bs, ACTION_DIM), jnp.float32)
    out = jax.block_until_ready(qfunction_forward(obs_feat, action, wt_slab, fp_slab))
    ref = qfunction_ref(obs_feat, action, params)
    assert out.shape == (bs,)
    # bf16 MXU inputs with f32 accumulation -> loosened tolerance vs f32 reference
    assert jnp.allclose(out, ref, atol=5e-2, rtol=5e-2), (out, ref)

    # secondary check: multi-step batch grid + ragged final block
    bs2 = 300
    k_obs2, k_act2 = jax.random.split(jax.random.PRNGKey(1))
    obs2 = jax.random.normal(k_obs2, (bs2, OBS_DIM), jnp.float32)
    act2 = jax.random.normal(k_act2, (bs2, ACTION_DIM), jnp.float32)
    out2 = jax.block_until_ready(qfunction_forward(obs2, act2, wt_slab, fp_slab))
    ref2 = qfunction_ref(obs2, act2, params)
    assert out2.shape == (bs2,)
    assert jnp.allclose(out2, ref2, atol=5e-2, rtol=5e-2), (out2, ref2)

    # third check: force the f32-epilogue (v5e) code path and a small tile
    out3 = jax.block_until_ready(
        qfunction_forward(obs2, act2, wt_slab, fp_slab, block_b=128,
                          bf16_epilogue=False))
    assert jnp.allclose(out3, ref2, atol=5e-2, rtol=5e-2), (out3, ref2)

    print("KERNEL_OK")
</pallas_src>

<mosaic_0001>
module attributes {stable_mosaic.version = 11 : i64} {
  func.func @kernel(%arg0: i32, %arg1: memref<128x33xf32, #tpu.memory_space<vmem>>, %arg2: memref<128x2xf32, #tpu.memory_space<vmem>>, %arg3: memref<304x64xbf16, #tpu.memory_space<vmem>>, %arg4: memref<248x8xf32, #tpu.memory_space<vmem>>, %arg5: memref<1x128xf32, #tpu.memory_space<vmem>>) attributes {dimension_semantics = [#tpu.dimension_semantics<parallel>], iteration_bounds = array<i64: 1>, scalar_prefetch = 0 : i64, scratch_operands = 0 : i64, tpu.core_type = #tpu.core_type<tc>, window_params = [{transform_indices = @transform_0, window_bounds = array<i64: 128, 33>}, {transform_indices = @transform_1, window_bounds = array<i64: 128, 2>}, {pipeline_mode = #tpu.pipeline_mode<synchronous>, transform_indices = @transform_2, window_bounds = array<i64: 304, 64>}, {pipeline_mode = #tpu.pipeline_mode<synchronous>, transform_indices = @transform_3, window_bounds = array<i64: 248, 8>}, {transform_indices = @transform_4, window_bounds = array<i64: 1, 128>}]} {
    %c0 = arith.constant 0 : index
    %c0_0 = arith.constant 0 : index
    %0 = vector.load %arg1[%c0, %c0_0] : memref<128x33xf32, #tpu.memory_space<vmem>>, vector<128x33xf32>
    %1 = vector.extract_strided_slice %0 {offsets = [0, 0], sizes = [128, 32], strides = [1, 1]} : vector<128x33xf32> to vector<128x32xf32>
    %2 = arith.truncf %1 : vector<128x32xf32> to vector<128x32xbf16>
    %3 = vector.extract_strided_slice %0 {offsets = [0, 32], sizes = [128, 1], strides = [1, 1]} : vector<128x33xf32> to vector<128x1xf32>
    %c0_1 = arith.constant 0 : index
    %c0_2 = arith.constant 0 : index
    %4 = vector.load %arg2[%c0_1, %c0_2] : memref<128x2xf32, #tpu.memory_space<vmem>>, vector<128x2xf32>
    %5 = arith.truncf %4 : vector<128x2xf32> to vector<128x2xbf16>
    %c0_3 = arith.constant 0 : index
    %c0_4 = arith.constant 0 : index
    %6 = vector.load %arg4[%c0_3, %c0_4] : memref<248x8xf32, #tpu.memory_space<vmem>>, vector<1x8xf32>
    %c8 = arith.constant 8 : index
    %c0_5 = arith.constant 0 : index
    %7 = vector.load %arg4[%c8, %c0_5] : memref<248x8xf32, #tpu.memory_space<vmem>>, vector<1x8xf32>
    %8 = arith.truncf %3 : vector<128x1xf32> to vector<128x1xbf16>
    %9 = arith.truncf %6 : vector<1x8xf32> to vector<1x8xbf16>
    %10 = vector.broadcast %8 : vector<128x1xbf16> to vector<128x8xbf16>
    %11 = vector.broadcast %9 : vector<1x8xbf16> to vector<128x8xbf16>
    %12 = arith.mulf %10, %11 : vector<128x8xbf16>
    %13 = arith.truncf %7 : vector<1x8xf32> to vector<1x8xbf16>
    %14 = vector.broadcast %13 : vector<1x8xbf16> to vector<128x8xbf16>
    %15 = arith.addf %12, %14 : vector<128x8xbf16>
    %cst = arith.constant 0.000000e+00 : bf16
    %16 = vector.broadcast %cst : bf16 to vector<128x8xbf16>
    %17 = arith.maximumf %15, %16 : vector<128x8xbf16>
    %c0_6 = arith.constant 0 : index
    %c0_7 = arith.constant 0 : index
    %18 = vector.load %arg3[%c0_6, %c0_7] : memref<304x64xbf16, #tpu.memory_space<vmem>>, vector<32x32xbf16>
    %cst_8 = arith.constant dense<0.000000e+00> : vector<32x128xf32>
    %19 = tpu.matmul %18, %2, %cst_8 {dimension_numbers = #tpu.dot_dimension_numbers<[1], [1], [0], [0], [0, 0, 1, 0], [], []>} : vector<32x32xbf16>, vector<128x32xbf16>, vector<32x128xf32> -> vector<32x128xf32>
    %c32 = arith.constant 32 : index
    %c0_9 = arith.constant 0 : index
    %20 = vector.load %arg3[%c32, %c0_9] : memref<304x64xbf16, #tpu.memory_space<vmem>>, vector<32x8xbf16>
    %cst_10 = arith.constant dense<0.000000e+00> : vector<32x128xf32>
    %21 = tpu.matmul %20, %17, %cst_10 {dimension_numbers = #tpu.dot_dimension_numbers<[1], [1], [0], [0], [0, 0, 1, 0], [], []>} : vector<32x8xbf16>, vector<128x8xbf16>, vector<32x128xf32> -> vector<32x128xf32>
    %22 = arith.addf %19, %21 : vector<32x128xf32>
    %c64 = arith.constant 64 : index
    %c0_11 = arith.constant 0 : index
    %23 = vector.load %arg3[%c64, %c0_11] : memref<304x64xbf16, #tpu.memory_space<vmem>>, vector<32x2xbf16>
    %cst_12 = arith.constant dense<0.000000e+00> : vector<32x128xf32>
    %24 = tpu.matmul %23, %5, %cst_12 {dimension_numbers = #tpu.dot_dimension_numbers<[1], [1], [0], [0], [0, 0, 1, 0], [], []>} : vector<32x2xbf16>, vector<128x2xbf16>, vector<32x128xf32> -> vector<32x128xf32>
    %25 = arith.addf %22, %24 : vector<32x128xf32>
    %c16 = arith.constant 16 : index
    %c0_13 = arith.constant 0 : index
    %26 = vector.load %arg4[%c16, %c0_13] : memref<248x8xf32, #tpu.memory_space<vmem>>, vector<32x1xf32>
    %27 = arith.truncf %25 : vector<32x128xf32> to vector<32x128xbf16>
    %28 = arith.truncf %26 : vector<32x1xf32> to vector<32x1xbf16>
    %29 = vector.broadcast %28 : vector<32x1xbf16> to vector<32x128xbf16>
    %30 = arith.addf %27, %29 : vector<32x128xbf16>
    %cst_14 = arith.constant 0.000000e+00 : bf16
    %31 = vector.broadcast %cst_14 : bf16 to vector<32x128xbf16>
    %32 = arith.maximumf %30, %31 : vector<32x128xbf16>
    %c96 = arith.constant 96 : index
    %c0_15 = arith.constant 0 : index
    %33 = vector.load %arg3[%c96, %c0_15] : memref<304x64xbf16, #tpu.memory_space<vmem>>, vector<64x32xbf16>
    %cst_16 = arith.constant dense<0.000000e+00> : vector<64x128xf32>
    %34 = tpu.matmul %33, %32, %cst_16 {dimension_numbers = #tpu.dot_dimension_numbers<[1], [0], [0], [1], [0, 0, 1, 1], [], []>} : vector<64x32xbf16>, vector<32x128xbf16>, vector<64x128xf32> -> vector<64x128xf32>
    %c48 = arith.constant 48 : index
    %c0_17 = arith.constant 0 : index
    %35 = vector.load %arg4[%c48, %c0_17] : memref<248x8xf32, #tpu.memory_space<vmem>>, vector<64x1xf32>
    %36 = arith.truncf %34 : vector<64x128xf32> to vector<64x128xbf16>
    %37 = arith.truncf %35 : vector<64x1xf32> to vector<64x1xbf16>
    %38 = vector.broadcast %37 : vector<64x1xbf16> to vector<64x128xbf16>
    %39 = arith.addf %36, %38 : vector<64x128xbf16>
    %cst_18 = arith.constant 0.000000e+00 : bf16
    %40 = vector.broadcast %cst_18 : bf16 to vector<64x128xbf16>
    %41 = arith.maximumf %39, %40 : vector<64x128xbf16>
    %c160 = arith.constant 160 : index
    %c0_19 = arith.constant 0 : index
    %42 = vector.load %arg3[%c160, %c0_19] : memref<304x64xbf16, #tpu.memory_space<vmem>>, vector<64x64xbf16>
    %cst_20 = arith.constant dense<0.000000e+00> : vector<64x128xf32>
    %43 = tpu.matmul %42, %41, %cst_20 {dimension_numbers = #tpu.dot_dimension_numbers<[1], [0], [0], [1], [0, 0, 1, 1], [], []>} : vector<64x64xbf16>, vector<64x128xbf16>, vector<64x128xf32> -> vector<64x128xf32>
    %c112 = arith.constant 112 : index
    %c0_21 = arith.constant 0 : index
    %44 = vector.load %arg4[%c112, %c0_21] : memref<248x8xf32, #tpu.memory_space<vmem>>, vector<64x1xf32>
    %45 = arith.truncf %43 : vector<64x128xf32> to vector<64x128xbf16>
    %46 = arith.truncf %44 : vector<64x1xf32> to vector<64x1xbf16>
    %47 = vector.broadcast %46 : vector<64x1xbf16> to vector<64x128xbf16>
    %48 = arith.addf %45, %47 : vector<64x128xbf16>
    %cst_22 = arith.constant 0.000000e+00 : bf16
    %49 = vector.broadcast %cst_22 : bf16 to vector<64x128xbf16>
    %50 = arith.maximumf %48, %49 : vector<64x128xbf16>
    %c224 = arith.constant 224 : index
    %c0_23 = arith.constant 0 : index
    %51 = vector.load %arg3[%c224, %c0_23] : memref<304x64xbf16, #tpu.memory_space<vmem>>, vector<32x64xbf16>
    %cst_24 = arith.constant dense<0.000000e+00> : vector<32x128xf32>
    %52 = tpu.matmul %51, %50, %cst_24 {dimension_numbers = #tpu.dot_dimension_numbers<[1], [0], [0], [1], [0, 0, 1, 1], [], []>} : vector<32x64xbf16>, vector<64x128xbf16>, vector<32x128xf32> -> vector<32x128xf32>
    %c176 = arith.constant 176 : index
    %c0_25 = arith.constant 0 : index
    %53 = vector.load %arg4[%c176, %c0_25] : memref<248x8xf32, #tpu.memory_space<vmem>>, vector<32x1xf32>
    %54 = arith.truncf %52 : vector<32x128xf32> to vector<32x128xbf16>
    %55 = arith.truncf %53 : vector<32x1xf32> to vector<32x1xbf16>
    %56 = vector.broadcast %55 : vector<32x1xbf16> to vector<32x128xbf16>
    %57 = arith.addf %54, %56 : vector<32x128xbf16>
    %cst_26 = arith.constant 0.000000e+00 : bf16
    %58 = vector.broadcast %cst_26 : bf16 to vector<32x128xbf16>
    %59 = arith.maximumf %57, %58 : vector<32x128xbf16>
    %c256 = arith.constant 256 : index
    %c0_27 = arith.constant 0 : index
    %60 = vector.load %arg3[%c256, %c0_27] : memref<304x64xbf16, #tpu.memory_space<vmem>>, vector<32x32xbf16>
    %cst_28 = arith.constant dense<0.000000e+00> : vector<32x128xf32>
    %61 = tpu.matmul %60, %59, %cst_28 {dimension_numbers = #tpu.dot_dimension_numbers<[1], [0], [0], [1], [0, 0, 1, 1], [], []>} : vector<32x32xbf16>, vector<32x128xbf16>, vector<32x128xf32> -> vector<32x128xf32>
    %c208 = arith.constant 208 : index
    %c0_29 = arith.constant 0 : index
    %62 = vector.load %arg4[%c208, %c0_29] : memref<248x8xf32, #tpu.memory_space<vmem>>, vector<32x1xf32>
    %63 = arith.truncf %61 : vector<32x128xf32> to vector<32x128xbf16>
    %64 = arith.truncf %62 : vector<32x1xf32> to vector<32x1xbf16>
    %65 = vector.broadcast %64 : vector<32x1xbf16> to vector<32x128xbf16>
    %66 = arith.addf %63, %65 : vector<32x128xbf16>
    %cst_30 = arith.constant 0.000000e+00 : bf16
    %67 = vector.broadcast %cst_30 : bf16 to vector<32x128xbf16>
    %68 = arith.maximumf %66, %67 : vector<32x128xbf16>
    %c288 = arith.constant 288 : index
    %c0_31 = arith.constant 0 : index
    %69 = vector.load %arg3[%c288, %c0_31] : memref<304x64xbf16, #tpu.memory_space<vmem>>, vector<1x32xbf16>
    %cst_32 = arith.constant dense<0.000000e+00> : vector<1x128xf32>
    %70 = tpu.matmul %69, %68, %cst_32 {dimension_numbers = #tpu.dot_dimension_numbers<[1], [0], [0], [1], [0, 0, 1, 1], [], []>} : vector<1x32xbf16>, vector<32x128xbf16>, vector<1x128xf32> -> vector<1x128xf32>
    %c240 = arith.constant 240 : index
    %c0_33 = arith.constant 0 : index
    %71 = vector.load %arg4[%c240, %c0_33] : memref<248x8xf32, #tpu.memory_space<vmem>>, vector<1x1xf32>
    %72 = vector.broadcast %71 : vector<1x1xf32> to vector<1x128xf32>
    %73 = arith.addf %70, %72 : vector<1x128xf32>
    %c0_34 = arith.constant 0 : index
    %c0_35 = arith.constant 0 : index
    %74 = vector.load %arg5[%c0_34, %c0_35] : memref<1x128xf32, #tpu.memory_space<vmem>>, vector<1x128xf32>
    tpu.vector_store %arg5[%c0_34, %c0_35], %73 {strides = array<i32>} : memref<1x128xf32, #tpu.memory_space<vmem>>, vector<1x128xf32>,
    return
  }
  func.func @transform_0(%arg0: i32) -> (i32, i32) {
    %c0_i32 = arith.constant 0 : i32
    %c0_i32_0 = arith.constant 0 : i32
    return %arg0, %c0_i32 : i32, i32
  }
  func.func @transform_1(%arg0: i32) -> (i32, i32) {
    %c0_i32 = arith.constant 0 : i32
    %c0_i32_0 = arith.constant 0 : i32
    return %arg0, %c0_i32 : i32, i32
  }
  func.func @transform_2(%arg0: i32) -> (i32, i32) {
    %c0_i32 = arith.constant 0 : i32
    %c0_i32_0 = arith.constant 0 : i32
    %c0_i32_1 = arith.constant 0 : i32
    return %c0_i32, %c0_i32_0 : i32, i32
  }
  func.func @transform_3(%arg0: i32) -> (i32, i32) {
    %c0_i32 = arith.constant 0 : i32
    %c0_i32_0 = arith.constant 0 : i32
    %c0_i32_1 = arith.constant 0 : i32
    return %c0_i32, %c0_i32_0 : i32, i32
  }
  func.func @transform_4(%arg0: i32) -> (i32, i32) {
    %c0_i32 = arith.constant 0 : i32
    %c0_i32_0 = arith.constant 0 : i32
    return %c0_i32, %arg0 : i32, i32
  }
}

</mosaic_0001>

<bundles_post_ra>
// kernel: tpu_custom_call.1
= control target key start
LH: loop header
LB: loop body
LE: loop exit
PB: predicated region body
PF: predicated region fallthrough
CT: control target
= control target key end

     0   :  { %v1278_v3 = vmov 32   ;;  %vm257_vm0 = vcmask 261120   ;;  %s1668_s0 = inlined_call_operand.vmem [shape: f32[8,33], index: 0, kind: input, shape index: {}]   ;;  %s1669_s1 = inlined_call_operand.vmem [shape: f32[8,2], index: 1, kind: input, shape index: {}]   ;;  %s1670_s2 = inlined_call_operand.vmem [shape: bf16[304,64], index: 2, kind: input, shape index: {}]   ;;  %s1671_s3 = inlined_call_operand.vmem [shape: f32[248,8], index: 3, kind: input, shape index: {}]   ;;  %s1672_s4 = inlined_call_operand.hbm [shape: f32[1,8], index: 4, kind: output, shape index: {}]  }
   0x1   :  { %v33_v0 = vld [vmem:[%s1668_s0 + $0x70] sm:$0xff]  ;;  %v34_v1 = vld [vmem:[%s1668_s0 + $0x78] sm:$0xff]  ;;  %v31_v2 = vld [vmem:[%s1668_s0 + $0x60] sm:$0xff]  ;;  %1234 = vset.pattern.permute.xlu0 %v1278_v3  ;;  %1235 = vset.pattern.permute.xlu1 %v1278_v3 }
   0x2   :  { %v42_v4 = vpack.c.bf16 %v34_v1, %v33_v0  ;;  %v32_v5 = vld [vmem:[%s1668_s0 + $0x68] sm:$0xff]  ;;  %v29_v6 = vld [vmem:[%s1668_s0 + $0x50] sm:$0xff]  ;;  %v30_v7 = vld [vmem:[%s1668_s0 + $0x58] sm:$0xff] }
   0x3   :  { %v40_v8 = vpack.c.bf16 %v30_v7, %v29_v6  ;;  %v27_v9 = vld [vmem:[%s1668_s0 + $0x40] sm:$0xff]  ;;  %v28_v10 = vld [vmem:[%s1668_s0 + $0x48] sm:$0xff]  ;;  %v41_v11 = vpack.c.bf16 %v32_v5, %v31_v2  ;;  %v25_v13 = vld [vmem:[%s1668_s0 + $0x30] sm:$0xff] }
   0x4   :  { %107 = vperm.xlu0 %1234, %v42_v4   ;;  %v39_v12 = vpack.c.bf16 %v28_v10, %v27_v9  ;;  %v26_v14 = vld [vmem:[%s1668_s0 + $0x38] sm:$0xff]  ;;  %v23_v15 = vld [vmem:[%s1668_s0 + $0x20] sm:$0xff]  ;;  %v24_v16 = vld [vmem:[%s1668_s0 + $0x28] sm:$0xff]  ;;  %1213 = vmatprep.subr.msk.bf16.mxu1 %vm257_vm0, %v42_v4  ;;  %v278_v19 = vsel %vm257_vm0, %v42_v4, 0 }
   0x5   :  { %97 = vperm.xlu1 %1235, %v40_v8   ;;  %v21_v17 = vld [vmem:[%s1668_s0 + $0x10] sm:$0xff]  ;;  %v22_v18 = vld [vmem:[%s1668_s0 + $0x18] sm:$0xff]  ;;  %v38_v20 = vpack.c.bf16 %v26_v14, %v25_v13  ;;  %v19_v21 = vld [vmem:[%s1668_s0] sm:$0xff]  ;;  %1110 = vmatpush3.bf16.xpose.msra.mxu1 %v278_v19  ;;  %v37_v23 = vpack.c.bf16 %v24_v16, %v23_v15  ;;  %v276_v26 = vsel %vm257_vm0, %v41_v11, 0 }
   0x6   :  { %v20_v22 = vld [vmem:[%s1668_s0 + $0x8] sm:$0xff]  ;;  %1214 = vmatprep.subr.msk.bf16.mxu1 %vm257_vm0, %v41_v11  ;;  %v36_v24 = vpack.c.bf16 %v22_v18, %v21_v17 }
   0x7   :  { %v35_v25 = vpack.c.bf16 %v20_v22, %v19_v21 }
   0x8   :  { %102 = vperm.xlu0 %1234, %v41_v11  }
   0x9   :  { %92 = vperm.xlu1 %1235, %v39_v12  }
   0xc   :  { %87 = vperm.xlu0 %1234, %v38_v20  }
   0xd   :  { %82 = vperm.xlu1 %1235, %v37_v23   ;;  %1112 = vmatpush3.bf16.xpose.msra.mxu1 %v276_v26 }
   0xe   :  { %1215 = vmatprep.subr.msk.bf16.mxu1 %vm257_vm0, %v40_v8 }
  0x10   :  { %77 = vperm.xlu0 %1234, %v36_v24  }
  0x11   :  { %72 = vperm.xlu1 %1235, %v35_v25  }
  0x12   :  { %9 = vsyncpa [#allocation3], 0  ;;  %v1279_v27 = vmov 0   ;;  %v274_v28 = vsel %vm257_vm0, %v40_v8, 0  ;;  %v272_v29 = vsel %vm257_vm0, %v39_v12, 0  ;;  %v270_v30 = vsel %vm257_vm0, %v38_v20, 0 }
  0x13   :  { %v268_v31 = vsel %vm257_vm0, %v37_v23, 0  ;;  %v266_v32 = vsel %vm257_vm0, %v36_v24, 0  ;;  %v264_v33 = vsel %vm257_vm0, %v35_v25, 0  ;;  %v1238_v34 = vld [vmem:[%s1670_s2 + $0x10] sm:$0xff]   ;;  %v1239_v35 = vld [vmem:[%s1670_s2] sm:$0xff]   ;;  %vm167_vm1 = vcmask 64512  }
  0x14   :  { %1236 = vset.pattern.permute.xlu0 %v1279_v27  ;;  %1105 = vmatprep.mubr.msk.bf16.mxu0 %vm167_vm1, %v1238_v34  ;;  %v1241_v36 = vld [vmem:[%s1670_s2 + $0x8] sm:$0xff]   ;;  %v113_v37 = vlaneseq  ;;  %v67_v38 = vld [vmem:[%s1671_s3] sm:$0x1]  ;;  %v427_v60 = vld [vmem:[%s1671_s3 + $0x10] sm:$0xff]  ;;  %vm343_vm2 = vcmask 15360   ;;  %vm626_vm3 = vcmask 523264  }
  0x15   :  { %1237 = vset.pattern.permute.xlu1 %v1279_v27  ;;  %1114 = vmatpush3.bf16.xpose.msra.mxu1 %v274_v28  ;;  %v68_v39 = vld [vmem:[%s1671_s3 + $0x8] sm:$0x1]  ;;  %v69_v40 = vpack.c.bf16 %v67_v38, %v67_v38  ;;  %v429_v58 = vld [vmem:[%s1671_s3 + $0x20] sm:$0xff]  ;;  %v428_v62 = vld [vmem:[%s1671_s3 + $0x18] sm:$0xff]  ;;  %vm1281_vm4 = vmmov 0   ;;  %s1282_s14 = smov [#allocation2]  }
  0x16   :  { %1216 = vmatprep.subr.msk.bf16.mxu1 %vm257_vm0, %v39_v12  ;;  %1125 = vmatprep.mubr.msk.bf16.mxu1 %vm257_vm0, %v1239_v35  ;;  %v114_v41 = vshrl.u32 %v113_v37, 7  ;;  %v125_v42 = vpack.c.bf16 %v68_v39, %v68_v39  ;;  %v430_v59 = vld [vmem:[%s1671_s3 + $0x28] sm:$0xff]  ;;  %v558_v63 = vld [vmem:[%s1671_s3 + $0x50] sm:$0xff]  ;;  %v559_v0 = vld [vmem:[%s1671_s3 + $0x58] sm:$0xff]  ;;  %v433_v3 = vpack.c.bf16 %v428_v62, %v427_v60  ;;  %s987_s15 = sshll.u32 %s1282_s14, 4  ;;  %s988_s15 = int_to_ptr.vmem [resolvable:$true] %s987_s15 }
  0x17   :  { %v111_v43 = vpack.i.b16 %v69_v40, %v69_v40  ;;  %v434_v61 = vpack.c.bf16 %v430_v59, %v429_v58  ;;  %v560_v4 = vld [vmem:[%s1671_s3 + $0x60] sm:$0xff]  ;;  %v561_v5 = vld [vmem:[%s1671_s3 + $0x68] sm:$0xff]  ;;  %v568_v6 = vpack.c.bf16 %v559_v0, %v558_v63  ;;  %v554_v8 = vld [vmem:[%s1671_s3 + $0x30] sm:$0xff]  ;;  %s1256_s16 = scalar_lea.vmem %s988_s15, 16  ;;  %s1260_s17 = scalar_lea.vmem %s988_s15, 32 }
  0x18   :  { %v115_v44 = vsub.s32 0, %v114_v41  ;;  %v127_v45 = vpack.i.b16 %v125_v42, %v125_v42  ;;  %437 = vperm.xlu1 %1237, %v433_v3   ;;  %v569_v7 = vpack.c.bf16 %v561_v5, %v560_v4  ;;  %v555_v9 = vld [vmem:[%s1671_s3 + $0x38] sm:$0xff]  ;;  %v556_v10 = vld [vmem:[%s1671_s3 + $0x40] sm:$0xff]  ;;  %v557_v11 = vld [vmem:[%s1671_s3 + $0x48] sm:$0xff]  ;;  %p1257_p0 = scmp.ne.s32.totalorder %s988_s15, %s1256_s16  ;;  %p1261_p1 = scmp.lt.s32.totalorder %s988_s15, %s988_s15 }
  0x19   :  { %442 = vperm.xlu0 %1236, %v434_v61   ;;  %v566_v14 = vpack.c.bf16 %v555_v9, %v554_v8  ;;  %v567_v17 = vpack.c.bf16 %v557_v11, %v556_v10  ;;  %v708_v18 = vld [vmem:[%s1671_s3 + $0x90] sm:$0xff]  ;;  %v709_v19 = vld [vmem:[%s1671_s3 + $0x98] sm:$0xff]  ;;  %v711_v21 = vld [vmem:[%s1671_s3 + $0xa8] sm:$0xff]  ;;  %p1262_p2 = scmp.lt.s32.totalorder %s1260_s17, %s1256_s16 }
  0x1a   :  { %v1392_v46 = vrot.slane %v111_v43, %v115_v44  ;;  %v1394_v47 = vrot.slane %v127_v45, %v115_v44  ;;  %v718_v22 = vpack.c.bf16 %v709_v19, %v708_v18  ;;  %v705_v26 = vld [vmem:[%s1671_s3 + $0x78] sm:$0xff]  ;;  %v819_v38 = vld [vmem:[%s1671_s3 + $0xc0] sm:$0xff]  ;;  %v820_v39 = vld [vmem:[%s1671_s3 + $0xc8] sm:$0xff] }
  0x1b   :  { %v818_v37 = vld [vmem:[%s1671_s3 + $0xb8] sm:$0xff]  ;;  %v824_v42 = vpack.c.bf16 %v820_v39, %v819_v38  ;;  %v908_v43 = vld [vmem:[%s1671_s3 + $0xd0] sm:$0xff]  ;;  %v910_v45 = vld [vmem:[%s1671_s3 + $0xe0] sm:$0xff]  ;;  %p1263_p3 = por %p1262_p2, %p1261_p1 }
  0x1c   :  { %587 = vperm.xlu1 %1237, %v569_v7   ;;  %v909_v44 = vld [vmem:[%s1671_s3 + $0xd8] sm:$0xff]  ;;  %v57_v5 = vld [vmem:[%s1669_s1 + $0x70] sm:$0xff]  ;;  %v56_v8 = vld [vmem:[%s1669_s1 + $0x68] sm:$0xff] }
  0x1d   :  { %1116 = vmatpush3.bf16.xpose.msra.mxu1 %v272_v29  ;;  %582 = vperm.xlu0 %1236, %v568_v6   ;;  %v706_v29 = vld [vmem:[%s1671_s3 + $0x80] sm:$0xff]  ;;  %v1240_v9 = vld [vmem:[%s1670_s2 + $0x18] sm:$0xff]   ;;  %v52_v18 = vld [vmem:[%s1669_s1 + $0x48] sm:$0xff]  ;;  %p1264_p4 = pnand %p1263_p3, %p1257_p0 }
  0x1e   :  { %1217 = vmatprep.subr.msk.bf16.mxu1 %vm257_vm0, %v38_v20  ;;  %v710_v20 = vld [vmem:[%s1671_s3 + $0xa0] sm:$0xff]  ;;  %v1243_v39 = vld [vmem:[%s1670_s2 + $0x28] sm:$0xff]  }
  0x1f   :  { %v1242_v10 = vld [vmem:[%s1670_s2 + $0x20] sm:$0xff]  }
  0x20   :  { %577 = vperm.xlu1 %1237, %v567_v17   ;;  %v51_v17 = vld [vmem:[%s1669_s1 + $0x40] sm:$0xff] }
  0x21   :  { %572 = vperm.xlu0 %1236, %v566_v14   ;;  %v54_v14 = vld [vmem:[%s1669_s1 + $0x58] sm:$0xff] }
  0x25   :  { %1118 = vmatpush3.bf16.xpose.msra.mxu1 %v270_v30  ;;  %v707_v30 = vld [vmem:[%s1671_s3 + $0x88] sm:$0xff]  ;;  %732 = vperm.xlu0 %1236, %v718_v22   ;;  %v50_v22 = vld [vmem:[%s1669_s1 + $0x38] sm:$0xff] }
  0x26   :  { %1218 = vmatprep.subr.msk.bf16.mxu1 %vm257_vm0, %v37_v23  ;;  %v717_v35 = vpack.c.bf16 %v707_v30, %v706_v29  ;;  %v45_v30 = vld [vmem:[%s1669_s1 + $0x10] sm:$0xff] }
  0x2d   :  { %1120 = vmatpush3.bf16.xpose.msra.mxu1 %v268_v31 }
  0x2e   :  { %1219 = vmatprep.subr.msk.bf16.mxu1 %vm257_vm0, %v36_v24  ;;  %v719_v24 = vpack.c.bf16 %v711_v21, %v710_v20  ;;  %v63_v20 = vpack.c.bf16 %v52_v18, %v51_v17  ;;  %v49_v21 = vld [vmem:[%s1669_s1 + $0x30] sm:$0xff] }
  0x30   :  { %737 = vperm.xlu1 %1237, %v719_v24   ;;  %v62_v24 = vpack.c.bf16 %v50_v22, %v49_v21 }
  0x34   :  { %727 = vperm.xlu1 %1237, %v717_v35   ;;  %v44_v35 = vld [vmem:[%s1669_s1 + $0x8] sm:$0xff] }
  0x35   :  { %1122 = vmatpush3.bf16.xpose.msra.mxu1 %v266_v32 }
  0x36   :  { %1220 = vmatprep.subr.msk.bf16.mxu1 %vm257_vm0, %v35_v25  ;;  %v704_v25 = vld [vmem:[%s1671_s3 + $0x70] sm:$0xff] }
  0x37   :  { %v716_v32 = vpack.c.bf16 %v705_v26, %v704_v25  ;;  %v47_v25 = vld [vmem:[%s1669_s1 + $0x20] sm:$0xff]  ;;  %v48_v26 = vld [vmem:[%s1669_s1 + $0x28] sm:$0xff] }
  0x38   :  { %832 = vperm.xlu1 %1237, %v824_v42   ;;  %v61_v29 = vpack.c.bf16 %v48_v26, %v47_v25 }
  0x39   :  { %722 = vperm.xlu0 %1236, %v716_v32  }
  0x3a   :  { %v357_v32 = vsel %vm343_vm2, %v61_v29, 0 }
  0x3d   :  { %1124 = vmatpush3.bf16.xpose.msra.mxu1 %v264_v33 }
  0x44   :  { %1126 = vmatmul.mubr.msk.bf16.vlgmr.msra.gmra.mxu1 %vm257_vm0, %v1241_v36  ;;  %v817_v36 = vld [vmem:[%s1671_s3 + $0xb0] sm:$0xff] }
  0x45   :  { %v823_v40 = vpack.c.bf16 %v818_v37, %v817_v36 }
  0x47   :  { %827 = vperm.xlu0 %1236, %v823_v40   ;;  %v1244_v40 = vld [vmem:[%s1670_s2 + $0x30] sm:$0xff]  }
  0x48   :  { %1153 = vmatprep.mubr.msk.bf16.mxu1 %vm257_vm0, %v1244_v40 }
  0x7f   :  { %v108_v48 = vpop.permute.xlu0 %107 }
  0x80   :  { %v124_v49 = vmul.bf16 %v1392_v46, %v108_v48  ;;  %v98_v52 = vpop.permute.xlu1 %97  ;;  %v911_v48 = vld [vmem:[%s1671_s3 + $0xe8] sm:$0xff] }
  0x81   :  { %v122_v54 = vmul.bf16 %v1392_v46, %v98_v52 }
  0x82   :  { %v140_v50 = vadd.bf16 %v1394_v47, %v124_v49 }
  0x83   :  { %v103_v51 = vpop.permute.xlu0 %102  ;;  %v138_v2 = vadd.bf16 %v1394_v47, %v122_v54  ;;  %v915_v54 = vpack.c.bf16 %v911_v48, %v910_v45 }
  0x84   :  { %v123_v53 = vmul.bf16 %v1392_v46, %v103_v51  ;;  %v148_v55 = vmax.bf16 %v1279_v27, %v140_v50  ;;  %v93_v13 = vpop.permute.xlu1 %92  ;;  %v914_v50 = vpack.c.bf16 %v909_v44, %v908_v43 }
  0x85   :  { %v146_v12 = vmax.bf16 %v1279_v27, %v138_v2  ;;  %v121_v15 = vmul.bf16 %v1392_v46, %v93_v13  ;;  %923 = vperm.xlu1 %1237, %v915_v54   ;;  %v53_v13 = vld [vmem:[%s1669_s1 + $0x50] sm:$0xff] }
  0x86   :  { %v139_v56 = vadd.bf16 %v1394_v47, %v123_v53  ;;  %1205 = vmatprep.subr.msk.bf16.mxu0 %vm167_vm1, %v148_v55  ;;  %v196_v57 = vsel %vm167_vm1, %v148_v55, 0  ;;  %918 = vperm.xlu0 %1236, %v914_v50  }
  0x87   :  { %1090 = vmatpush3.bf16.xpose.msra.mxu0 %v196_v57  ;;  %v137_v23 = vadd.bf16 %v1394_v47, %v121_v15  ;;  %v88_v28 = vpop.permute.xlu0 %87  ;;  %v190_v31 = vsel %vm167_vm1, %v146_v12, 0  ;;  %v931_v57 = vld [vmem:[%s1671_s3 + $0xf0] sm:$0x1] }
  0x88   :  { %v147_v1 = vmax.bf16 %v1279_v27, %v139_v56  ;;  %v120_v34 = vmul.bf16 %v1392_v46, %v88_v28  ;;  %v83_v49 = vpop.permute.xlu1 %82  ;;  %v360_v28 = vsel %vm343_vm2, %v62_v24, 0 }
  0x89   :  { %v145_v33 = vmax.bf16 %v1279_v27, %v137_v23  ;;  %v119_v52 = vmul.bf16 %v1392_v46, %v83_v49  ;;  %934 = vperm.xlu1 %1237, %v931_v57   ;;  %v363_v23 = vsel %vm343_vm2, %v63_v20, 0 }
  0x8a   :  { %1206 = vmatprep.subr.msk.bf16.mxu0 %vm167_vm1, %v147_v1  ;;  %v193_v16 = vsel %vm167_vm1, %v147_v1, 0  ;;  %v136_v41 = vadd.bf16 %v1394_v47, %v120_v34  ;;  %v43_v34 = vld [vmem:[%s1669_s1] sm:$0xff] }
  0x8b   :  { %v187_v53 = vsel %vm167_vm1, %v145_v33, 0  ;;  %v135_v55 = vadd.bf16 %v1394_v47, %v119_v52  ;;  %v78_v56 = vpop.permute.xlu0 %77  ;;  %v59_v37 = vpack.c.bf16 %v44_v35, %v43_v34  ;;  %v1249_v34 = vld [vmem:[%s1670_s2 + $0x58] sm:$0xff]   ;;  %v1250_v35 = vld [vmem:[%s1670_s2 + $0x60] sm:$0xff]  }
  0x8c   :  { %v144_v51 = vmax.bf16 %v1279_v27, %v136_v41  ;;  %v118_v59 = vmul.bf16 %v1392_v46, %v78_v56  ;;  %v73_v62 = vpop.permute.xlu1 %72 }
  0x8d   :  { %v143_v58 = vmax.bf16 %v1279_v27, %v135_v55  ;;  %v117_v0 = vmul.bf16 %v1392_v46, %v73_v62  ;;  %v58_v46 = vld [vmem:[%s1669_s1 + $0x78] sm:$0xff]  ;;  %v351_v38 = vsel %vm343_vm2, %v59_v37, 0 }
  0x8e   :  { %v184_v60 = vsel %vm167_vm1, %v144_v51, 0  ;;  %v134_v61 = vadd.bf16 %v1394_v47, %v118_v59  ;;  %v66_v6 = vpack.c.bf16 %v58_v46, %v57_v5 }
  0x8f   :  { %1092 = vmatpush3.bf16.xpose.msra.mxu0 %v193_v16  ;;  %v181_v1 = vsel %vm167_vm1, %v143_v58, 0  ;;  %v133_v2 = vadd.bf16 %v1394_v47, %v117_v0  ;;  %v55_v47 = vld [vmem:[%s1669_s1 + $0x60] sm:$0xff]  ;;  %v64_v16 = vpack.c.bf16 %v54_v14, %v53_v13 }
  0x90   :  { %1207 = vmatprep.subr.msk.bf16.mxu0 %vm167_vm1, %v146_v12  ;;  %v142_v63 = vmax.bf16 %v1279_v27, %v134_v61  ;;  %v372_v11 = vsel %vm343_vm2, %v66_v6, 0  ;;  %v65_v12 = vpack.c.bf16 %v56_v8, %v55_v47  ;;  %v1247_v47 = vld [vmem:[%s1670_s2 + $0x48] sm:$0xff]   ;;  %v1248_v8 = vld [vmem:[%s1670_s2 + $0x50] sm:$0xff]  }
  0x91   :  { %v141_v3 = vmax.bf16 %v1279_v27, %v133_v2  ;;  %v366_v19 = vsel %vm343_vm2, %v64_v16, 0 }
  0x92   :  { %v178_v4 = vsel %vm167_vm1, %v142_v63, 0  ;;  %v369_v15 = vsel %vm343_vm2, %v65_v12, 0 }
  0x93   :  { %v175_v7 = vsel %vm167_vm1, %v141_v3, 0 }
  0x94   :  { %v443_v0 = vpop.permute.xlu0 %442 }
  0x97   :  { %1094 = vmatpush3.bf16.xpose.msra.mxu0 %v190_v31  ;;  %v46_v31 = vld [vmem:[%s1669_s1 + $0x18] sm:$0xff] }
  0x98   :  { %1208 = vmatprep.subr.msk.bf16.mxu0 %vm167_vm1, %v145_v33  ;;  %v60_v33 = vpack.c.bf16 %v46_v31, %v45_v30  ;;  %v583_v22 = vpop.permute.xlu0 %582 }
  0x9a   :  { %v354_v36 = vsel %vm343_vm2, %v60_v33, 0 }
  0x9c   :  { %v573_v30 = vpop.permute.xlu0 %572 }
  0x9f   :  { %1096 = vmatpush3.bf16.xpose.msra.mxu0 %v187_v53 }
  0xa0   :  { %1209 = vmatprep.subr.msk.bf16.mxu0 %vm167_vm1, %v144_v51 }
  0xa7   :  { %1098 = vmatpush3.bf16.xpose.msra.mxu0 %v184_v60 }
  0xa8   :  { %1210 = vmatprep.subr.msk.bf16.mxu0 %vm167_vm1, %v143_v58 }
  0xaf   :  { %1100 = vmatpush3.bf16.xpose.msra.mxu0 %v181_v1 }
  0xb0   :  { %1211 = vmatprep.subr.msk.bf16.mxu0 %vm167_vm1, %v142_v63 }
  0xb7   :  { %1102 = vmatpush3.bf16.xpose.msra.mxu0 %v178_v4 }
  0xb8   :  { %1212 = vmatprep.subr.msk.bf16.mxu0 %vm167_vm1, %v141_v3  ;;  %v438_v3 = vpop.permute.xlu1 %437 }
  0xbf   :  { %1104 = vmatpush3.bf16.xpose.msra.mxu0 %v175_v7  ;;  %v1246_v7 = vld [vmem:[%s1670_s2 + $0x40] sm:$0xff]  }
  0xc0   :  { %1221 = vmatprep.subr.msk.bf16.mxu0 %vm343_vm2, %v66_v6  ;;  %v1245_v6 = vld [vmem:[%s1670_s2 + $0x38] sm:$0xff]  }
  0xc6   :  { %1106 = vmatmul.mubr.msk.bf16.vlgmr.msra.gmra.mxu0 %vm167_vm1, %v1240_v9 }
  0xc7   :  { %1130 = vmatpush3.bf16.xpose.msra.mxu0 %v372_v11  ;;  %1145 = vmatprep.mubr.msk.bf16.mxu0 %vm343_vm2, %v1242_v10 }
  0xc8   :  { %1222 = vmatprep.subr.msk.bf16.mxu0 %vm343_vm2, %v65_v12 }
  0xcf   :  { %1132 = vmatpush3.bf16.xpose.msra.mxu0 %v369_v15  ;;  %v588_v15 = vpop.permute.xlu1 %587 }
  0xd0   :  { %1223 = vmatprep.subr.msk.bf16.mxu0 %vm343_vm2, %v64_v16 }
  0xd3   :  { %v578_v25 = vpop.permute.xlu1 %577 }
  0xd7   :  { %1134 = vmatpush3.bf16.xpose.msra.mxu0 %v366_v19 }
  0xd8   :  { %1224 = vmatprep.subr.msk.bf16.mxu0 %vm343_vm2, %v63_v20 }
  0xdf   :  { %1136 = vmatpush3.bf16.xpose.msra.mxu0 %v363_v23 }
  0xe0   :  { %1225 = vmatprep.subr.msk.bf16.mxu0 %vm343_vm2, %v62_v24 }
  0xe7   :  { %1138 = vmatpush3.bf16.xpose.msra.mxu0 %v360_v28 }
  0xe8   :  { %1226 = vmatprep.subr.msk.bf16.mxu0 %vm343_vm2, %v61_v29 }
  0xef   :  { %1140 = vmatpush3.bf16.xpose.msra.mxu0 %v357_v32 }
  0xf0   :  { %1227 = vmatprep.subr.msk.bf16.mxu0 %vm343_vm2, %v60_v33 }
  0xf7   :  { %1142 = vmatpush3.bf16.xpose.msra.mxu0 %v354_v36  ;;  %v1251_v36 = vld [vmem:[%s1670_s2 + $0x68] sm:$0xff]  }
  0xf8   :  { %1228 = vmatprep.subr.msk.bf16.mxu0 %vm343_vm2, %v59_v37  ;;  %v1252_v37 = vld [vmem:[%s1670_s2 + $0x70] sm:$0xff]  }
  0xff   :  { %1144 = vmatpush3.bf16.xpose.msra.mxu0 %v351_v38 }
 0x104   :  { %v1127_v42 = vpop.f32.mrf.mxu1 }
 0x106   :  { %1146 = vmatmul.mubr.msk.bf16.vlgmr.msra.gmra.mxu0 %vm343_vm2, %v1243_v39  ;;  %v314_v44 = vpop.f32.mrf.mxu1 }
 0x108   :  { %v1128_v48 = vpop.f32.mrf.mxu1 }
 0x10a   :  { %v317_v51 = vpop.f32.mrf.mxu1 }
 0x186   :  { %v1107_v41 = vpop.f32.mrf.mxu0 }
 0x187   :  { %v323_v53 = vadd.f32 %v1127_v42, %v1107_v41 }
 0x188   :  { %v232_v43 = vpop.f32.mrf.mxu0 }
 0x189   :  { %v315_v56 = vadd.f32 %v314_v44, %v232_v43  ;;  %v738_v44 = vpop.permute.xlu1 %737 }
 0x18a   :  { %v1108_v45 = vpop.f32.mrf.mxu0 }
 0x18b   :  { %v326_v54 = vadd.f32 %v1128_v48, %v1108_v45 }
 0x18c   :  { %v235_v49 = vpop.f32.mrf.mxu0 }
 0x18d   :  { %v318_v57 = vadd.f32 %v317_v51, %v235_v49 }
 0x1c6   :  { %v1147_v50 = vpop.f32.mrf.mxu0 }
 0x1c7   :  { %v425_v58 = vadd.f32 %v1147_v50, %v323_v53  ;;  %v733_v53 = vpop.permute.xlu0 %732 }
 0x1c8   :  { %v408_v52 = vpop.f32.mrf.mxu0 }
 0x1c9   :  { %v423_v61 = vadd.f32 %v408_v52, %v315_v56  ;;  %v728_v56 = vpop.permute.xlu1 %727 }
 0x1ca   :  { %v1148_v55 = vpop.f32.mrf.mxu0 }
 0x1cb   :  { %v426_v59 = vadd.f32 %v1148_v55, %v326_v54 }
 0x1cc   :  { %v411_v60 = vpop.f32.mrf.mxu0 }
 0x1cd   :  { %v432_v62 = vpack.c.bf16 %v426_v59, %v425_v58  ;;  %v424_v63 = vadd.f32 %v411_v60, %v318_v57  ;;  %v723_v60 = vpop.permute.xlu0 %722 }
 0x1cf   :  { %v446_v1 = vadd.bf16 %v443_v0, %v432_v62  ;;  %v431_v2 = vpack.c.bf16 %v424_v63, %v423_v61  ;;  %v1253_v0 = vld [vmem:[%s1670_s2 + $0x78] sm:$0xff]  }
 0x1d1   :  { %v445_v4 = vadd.bf16 %v438_v3, %v431_v2  ;;  %v448_v5 = vmax.bf16 %v1279_v27, %v446_v1  ;;  %v1254_v1 = vld [vmem:[%s1670_s2 + $0x80] sm:$0xff]  }
 0x1d3   :  { %1149 = vmatprep.subr.bf16.mxu1 %v448_v5  ;;  %v447_v46 = vmax.bf16 %v1279_v27, %v445_v4 }
 0x1d4   :  { %1150 = vmatpush3.bf16.msra.mxu1 %v448_v5 }
 0x1d5   :  { %1151 = vmatprep.subr.bf16.mxu1 %v447_v46 }
 0x1d8   :  { %1152 = vmatpush3.bf16.msra.mxu1 %v447_v46  ;;  %v833_v46 = vpop.permute.xlu1 %832 }
 0x1db   :  { %1154 = vmatmul.mubr.msk.bf16.vlgmr.msra.gmra.mxu1 %vm257_vm0, %v1245_v6 }
 0x1dc   :  { %1157 = vmatprep.mubr.msk.bf16.mxu1 %vm257_vm0, %v1246_v7 }
 0x1e3   :  { %1158 = vmatmul.mubr.msk.bf16.gmra.mxu1 %vm257_vm0, %v1247_v47 }
 0x1e4   :  { %1169 = vmatprep.mubr.msk.bf16.mxu1 %vm626_vm3, %v1248_v8  ;;  %v828_v8 = vpop.permute.xlu0 %827 }
 0x29b   :  { %v1155_v9 = vpop.f32.mrf.mxu1 }
 0x29d   :  { %v523_v10 = vpop.f32.mrf.mxu1 }
 0x29f   :  { %v1156_v11 = vpop.f32.mrf.mxu1 }
 0x2a0   :  { %v563_v19 = vpack.c.bf16 %v1156_v11, %v1155_v9 }
 0x2a1   :  { %v526_v12 = vpop.f32.mrf.mxu1 }
 0x2a2   :  { %v591_v26 = vadd.bf16 %v578_v25, %v563_v19  ;;  %v562_v28 = vpack.c.bf16 %v526_v12, %v523_v10  ;;  %v1255_v12 = vld [vmem:[%s1670_s2 + $0x88] sm:$0xff]  }
 0x2a3   :  { %v1159_v13 = vpop.f32.mrf.mxu1 }
 0x2a4   :  { %v590_v31 = vadd.bf16 %v573_v30, %v562_v28  ;;  %v595_v32 = vmax.bf16 %v1279_v27, %v591_v26  ;;  %v930_v26 = vld [vmem:[%s1670_s2 + $0x90] sm:$0x1] }
 0x2a5   :  { %v539_v14 = vpop.f32.mrf.mxu1 }
 0x2a6   :  { %v594_v33 = vmax.bf16 %v1279_v27, %v590_v31 }
 0x2a7   :  { %v1160_v16 = vpop.f32.mrf.mxu1 }
 0x2a8   :  { %v565_v17 = vpack.c.bf16 %v1160_v16, %v1159_v13  ;;  %v1280_v13 = vmov 0.0  }
 0x2a9   :  { %v542_v18 = vpop.f32.mrf.mxu1 }
 0x2aa   :  { %v593_v20 = vadd.bf16 %v588_v15, %v565_v17  ;;  %v564_v21 = vpack.c.bf16 %v542_v18, %v539_v14  ;;  %v924_v18 = vpop.permute.xlu1 %923 }
 0x2ac   :  { %v592_v23 = vadd.bf16 %v583_v22, %v564_v21  ;;  %v597_v24 = vmax.bf16 %v1279_v27, %v593_v20  ;;  %v919_v22 = vpop.permute.xlu0 %918 }
 0x2ae   :  { %1161 = vmatprep.subr.bf16.mxu1 %v597_v24  ;;  %v596_v29 = vmax.bf16 %v1279_v27, %v592_v23  ;;  %v935_v28 = vpop.permute.xlu1 %934 }
 0x2af   :  { %1162 = vmatpush3.bf16.msra.mxu1 %v597_v24 }
 0x2b0   :  { %1163 = vmatprep.subr.bf16.mxu1 %v596_v29 }
 0x2b3   :  { %1164 = vmatpush3.bf16.msra.mxu1 %v596_v29 }
 0x2b4   :  { %1165 = vmatprep.subr.bf16.mxu1 %v595_v32 }
 0x2b7   :  { %1166 = vmatpush3.bf16.msra.mxu1 %v595_v32 }
 0x2b8   :  { %1167 = vmatprep.subr.bf16.mxu1 %v594_v33 }
 0x2bb   :  { %1168 = vmatpush3.bf16.msra.mxu1 %v594_v33 }
 0x2be   :  { %1170 = vmatmul.mubr.msk.bf16.vlgmr.msra.gmra.mxu1 %vm626_vm3, %v1249_v34 }
 0x2bf   :  { %1173 = vmatprep.mubr.msk.bf16.mxu1 %vm626_vm3, %v1250_v35 }
 0x2c6   :  { %1174 = vmatmul.mubr.msk.bf16.gmra.mxu1 %vm626_vm3, %v1251_v36 }
 0x2c7   :  { %1185 = vmatprep.mubr.msk.bf16.mxu1 %vm626_vm3, %v1252_v37 }
 0x37e   :  { %v1171_v38 = vpop.f32.mrf.mxu1 }
 0x380   :  { %v673_v39 = vpop.f32.mrf.mxu1 }
 0x382   :  { %v1172_v40 = vpop.f32.mrf.mxu1 }
 0x383   :  { %v713_v50 = vpack.c.bf16 %v1172_v40, %v1171_v38 }
 0x384   :  { %v676_v41 = vpop.f32.mrf.mxu1 }
 0x385   :  { %v741_v57 = vadd.bf16 %v728_v56, %v713_v50  ;;  %v712_v58 = vpack.c.bf16 %v676_v41, %v673_v39 }
 0x386   :  { %v1175_v42 = vpop.f32.mrf.mxu1 }
 0x387   :  { %v740_v61 = vadd.bf16 %v723_v60, %v712_v58  ;;  %v745_v62 = vmax.bf16 %v1279_v27, %v741_v57 }
 0x388   :  { %v689_v43 = vpop.f32.mrf.mxu1 }
 0x389   :  { %v744_v63 = vmax.bf16 %v1279_v27, %v740_v61 }
 0x38a   :  { %v1176_v45 = vpop.f32.mrf.mxu1 }
 0x38b   :  { %v715_v48 = vpack.c.bf16 %v1176_v45, %v1175_v42 }
 0x38c   :  { %v692_v49 = vpop.f32.mrf.mxu1 }
 0x38d   :  { %v743_v51 = vadd.bf16 %v738_v44, %v715_v48  ;;  %v714_v52 = vpack.c.bf16 %v692_v49, %v689_v43 }
 0x38f   :  { %v742_v54 = vadd.bf16 %v733_v53, %v714_v52  ;;  %v747_v55 = vmax.bf16 %v1279_v27, %v743_v51 }
 0x391   :  { %1177 = vmatprep.subr.bf16.mxu1 %v747_v55  ;;  %v746_v59 = vmax.bf16 %v1279_v27, %v742_v54 }
 0x392   :  { %1178 = vmatpush3.bf16.msra.mxu1 %v747_v55 }
 0x393   :  { %1179 = vmatprep.subr.bf16.mxu1 %v746_v59 }
 0x396   :  { %1180 = vmatpush3.bf16.msra.mxu1 %v746_v59 }
 0x397   :  { %1181 = vmatprep.subr.bf16.mxu1 %v745_v62 }
 0x39a   :  { %1182 = vmatpush3.bf16.msra.mxu1 %v745_v62 }
 0x39b   :  { %1183 = vmatprep.subr.bf16.mxu1 %v744_v63 }
 0x39e   :  { %1184 = vmatpush3.bf16.msra.mxu1 %v744_v63 }
 0x3a1   :  { %1186 = vmatmul.mubr.msk.bf16.vlgmr.msra.gmra.mxu1 %vm626_vm3, %v1253_v0 }
 0x3a2   :  { %1193 = vmatprep.mubr.msk.bf16.mxu1 %vm257_vm0, %v1254_v1 }
 0x461   :  { %v1187_v2 = vpop.f32.mrf.mxu1 }
 0x463   :  { %v802_v3 = vpop.f32.mrf.mxu1 }
 0x465   :  { %v1188_v4 = vpop.f32.mrf.mxu1 }
 0x466   :  { %v822_v5 = vpack.c.bf16 %v1188_v4, %v1187_v2 }
 0x467   :  { %v805_v6 = vpop.f32.mrf.mxu1 }
 0x468   :  { %v836_v7 = vadd.bf16 %v833_v46, %v822_v5  ;;  %v821_v47 = vpack.c.bf16 %v805_v6, %v802_v3 }
 0x46a   :  { %v835_v9 = vadd.bf16 %v828_v8, %v821_v47  ;;  %v838_v10 = vmax.bf16 %v1279_v27, %v836_v7 }
 0x46c   :  { %1189 = vmatprep.subr.bf16.mxu1 %v838_v10  ;;  %v837_v11 = vmax.bf16 %v1279_v27, %v835_v9 }
 0x46d   :  { %1190 = vmatpush3.bf16.msra.mxu1 %v838_v10 }
 0x46e   :  { %1191 = vmatprep.subr.bf16.mxu1 %v837_v11 }
 0x471   :  { %1192 = vmatpush3.bf16.msra.mxu1 %v837_v11 }
 0x472   :  { %1197 = vmatprep.subr.bf16.mxu1 %v1280_v13 }
 0x474   :  { %1194 = vmatmul.mubr.msk.bf16.vlgmr.msra.gmra.mxu1 %vm257_vm0, %v1255_v12 }
 0x475   :  { %1201 = vmatprep.mubr.msk.bf16.mxu1 %vm1281_vm4, %v1280_v13 }
 0x534   :  { %v1195_v14 = vpop.f32.mrf.mxu1 }
 0x536   :  { %v893_v15 = vpop.f32.mrf.mxu1 }
 0x538   :  { %v1196_v16 = vpop.f32.mrf.mxu1 }
 0x539   :  { %v913_v17 = vpack.c.bf16 %v1196_v16, %v1195_v14 }
 0x53a   :  { %v896_v19 = vpop.f32.mrf.mxu1 }
 0x53b   :  { %v927_v20 = vadd.bf16 %v924_v18, %v913_v17  ;;  %v912_v21 = vpack.c.bf16 %v896_v19, %v893_v15 }
 0x53d   :  { %v929_v23 = vmax.bf16 %v1279_v27, %v927_v20  ;;  %v926_v24 = vadd.bf16 %v919_v22, %v912_v21 }
 0x53f   :  { %1198 = vmatpush3.bf16.msra.mxu1 %v929_v23  ;;  %v928_v25 = vmax.bf16 %v1279_v27, %v926_v24 }
 0x540   :  { %1199 = vmatprep.subr.bf16.mxu1 %v1280_v13 }
 0x543   :  { %1200 = vmatpush3.bf16.msra.mxu1 %v928_v25 }
 0x546   :  { %1202 = vmatmul.mubr.msk.bf16.vlgmr.msra.gmra.mxu1 %vm257_vm0, %v930_v26 }
 0x606   :  { %v974_v29 = vpop.f32.mrf.mxu1 }
 0x607   :  { %v975_v30 = vadd.f32 %v974_v29, %v935_v28 }
 0x608   :  { %v1203_v31 = vpop.f32.mrf.mxu1 }
 0x609   :  { %980 = vst [vmem:[#allocation2] sm:$0x1] %v975_v30 }
 0x60a   :  { %v977_v32 = vpop.f32.mrf.mxu1 }
 0x60b   :  { %1267 = shalt.err (!%p1264_p4)
}
 0x60c   :  { %990 = dma.vmem_to_hbm [thread:$0]  %s988_s15, 16, %s1672_s4, [#allocation3]   ;;  %v1204_v27 = vpop.f32.mrf.mxu1 }
 0x60d   :  { %1276 = dma.done.wait [#allocation3], 16  }
 0x60e   :  { %1277 = vsyncadd [#allocation3], 4294967280 }
 0x60f   :  { %994 = vsyncpa [#allocation3], 1 }

</bundles_post_ra>
